<compile_context>
chip_gen: v6e
topology: v6e:2x2x1
jax: 0.10.0
libtpu: 0.0.40
codegen_flags: <defaults>
</compile_context>

<pallas_src>
import functools

import jax
import jax.numpy as jnp
from jax.experimental import pallas as pl
from jax.experimental.pallas import tpu as pltpu


def _conv_lstm_kernel(xcat_ref, w_ref, b_ref, cprev_ref, h_ref, c_ref,
                      xpad_ref, col_ref, *, H, L):
    # xcat_ref : (C_in, Nt)      channel-major concat(x, h_prev), Nt = Bt*L
    # w_ref    : (4H, 3*C_in)    fused im2col conv weight (tap-major along K)
    # b_ref    : (4H, 1)         conv bias
    # cprev_ref: (H, Nt)         previous cell state
    # h_ref    : (H, Nt)         output hidden state
    # c_ref    : (H, Nt)         output cell state
    # xpad_ref : (C_in, Nt + 2)  VMEM scratch (length-padded slab)
    # col_ref  : (3*C_in, Nt)    VMEM scratch (im2col slab)
    c_in, nt = xcat_ref.shape
    x = xcat_ref[...]                                        # (C_in, Nt) f32

    # Padded copy so the k=0 / k=2 conv taps become plain static lane-offset
    # slices (no OOB reads, no rolls).  Two tiny vreg stores worth of fill.
    xpad_ref[...] = jnp.zeros_like(xpad_ref)
    xpad_ref[:, pl.ds(1, nt)] = x

    left = xpad_ref[:, pl.ds(0, nt)]                         # value at l-1
    right = xpad_ref[:, pl.ds(2, nt)]                        # value at l+1

    # padding=1 is per sample: zero the taps that would cross a sample
    # boundary in the flattened (batch * length) lane axis.
    pos = jax.lax.broadcasted_iota(jnp.int32, (1, nt), 1) % L
    left = jnp.where(pos == 0, 0.0, left)
    right = jnp.where(pos == L - 1, 0.0, right)

    # im2col slab: one fused MXU matmul covers all 3 taps and all 4 gates.
    col_ref[pl.ds(0, c_in), :] = left
    col_ref[pl.ds(c_in, c_in), :] = x
    col_ref[pl.ds(2 * c_in, c_in), :] = right

    acc = jnp.dot(w_ref[...], col_ref[...],
                  preferred_element_type=jnp.float32)
    acc = acc + b_ref[...]                                   # (4H, Nt)

    # Gates in the same order as torch.split.
    netin = acc[0:H]
    igate = acc[H:2 * H]
    fgate = acc[2 * H:3 * H]
    ogate = acc[3 * H:4 * H]

    act_input = jnp.tanh(netin)
    act_igate = jax.nn.sigmoid(igate)
    act_fgate = jax.nn.sigmoid(fgate)
    act_ogate = jax.nn.sigmoid(ogate)

    c_prev = cprev_ref[...].astype(jnp.float32)
    c_curr = act_fgate * c_prev + act_igate * act_input
    h_curr = act_ogate * jnp.tanh(c_curr)

    h_ref[...] = h_curr.astype(h_ref.dtype)
    c_ref[...] = c_curr.astype(c_ref.dtype)


def _pick_batch_tile(B, L, max_lanes=4096):
    """Batch elements per grid step; Bt*L lanes are flattened per step."""
    if B * L <= max_lanes:
        return B                      # single grid step, block == full array
    for bt in range(B - 1, 0, -1):    # need (Bt*L) % 128 == 0 once tiling
        if B % bt == 0 and bt * L <= max_lanes and (bt * L) % 128 == 0:
            return bt
    return B                          # fall back: one big step


@jax.jit
def conv_lstm_cell(x, h_prev, c_prev, weight, bias):
    """One ConvLSTMCell.forward step.

    x      : (B, input_size, L)    float32
    h_prev : (B, lstm_cells, L)    float32
    c_prev : (B, lstm_cells, L)    float32
    weight : (4*lstm_cells, input_size + lstm_cells, 3)  (PyTorch Conv1d layout)
    bias   : (4*lstm_cells,)
    returns (h_curr, c_curr), each (B, lstm_cells, L)
    """
    B, Cx, L = x.shape
    H = h_prev.shape[1]
    C_in = Cx + H

    Bt = _pick_batch_tile(B, L)
    nb = B // Bt
    N = B * L
    Nt = Bt * L

    # Layout plumbing in plain JAX (fused by XLA): channel-major with batch
    # folded into the lane axis -> lane-dense matmul N dimension of B*L.
    xcat_t = (jnp.concatenate([x, h_prev], axis=1)      # (B, C_in, L)
              .transpose(1, 0, 2)                       # (C_in, B, L)
              .reshape(C_in, N))
    cprev_t = c_prev.transpose(1, 0, 2).reshape(H, N)

    # Fused im2col weight: w2[o, k*C_in + c] = weight[o, c, k].
    w2 = jnp.transpose(weight, (0, 2, 1)).reshape(4 * H, 3 * C_in)
    b2 = bias.reshape(4 * H, 1)

    kernel = functools.partial(_conv_lstm_kernel, H=H, L=L)

    h_t, c_t = pl.pallas_call(
        kernel,
        out_shape=(
            jax.ShapeDtypeStruct((H, N), x.dtype),
            jax.ShapeDtypeStruct((H, N), x.dtype),
        ),
        grid_spec=pltpu.PrefetchScalarGridSpec(
            num_scalar_prefetch=0,
            grid=(nb,),
            in_specs=[
                pl.BlockSpec((C_in, Nt), lambda i: (0, i)),
                pl.BlockSpec((4 * H, 3 * C_in), lambda i: (0, 0)),
                pl.BlockSpec((4 * H, 1), lambda i: (0, 0)),
                pl.BlockSpec((H, Nt), lambda i: (0, i)),
            ],
            out_specs=[
                pl.BlockSpec((H, Nt), lambda i: (0, i)),
                pl.BlockSpec((H, Nt), lambda i: (0, i)),
            ],
            scratch_shapes=[
                pltpu.VMEM((C_in, Nt + 2), jnp.float32),      # padded slab
                pltpu.VMEM((3 * C_in, Nt), jnp.float32),      # im2col slab
            ],
        ),
        compiler_params=pltpu.CompilerParams(
            dimension_semantics=("parallel",),
        ),
        # Donate the (transposed) previous-cell-state buffer to c_out.
        input_output_aliases={3: 1},
    )(xcat_t, w2, b2, cprev_t)

    h_out = h_t.reshape(H, B, L).transpose(1, 0, 2)
    c_out = c_t.reshape(H, B, L).transpose(1, 0, 2)
    return h_out, c_out


def ref_conv_lstm_cell(x, h_prev, c_prev, weight, bias):
    """Pure-JAX reference matching the PyTorch forward."""
    xcat = jnp.concatenate([x, h_prev], axis=1)
    conv = jax.lax.conv_general_dilated(
        xcat, weight, window_strides=(1,), padding=((1, 1),),
        dimension_numbers=("NCH", "OIH", "NCH"),
    ) + bias[None, :, None]
    netin, igate, fgate, ogate = jnp.split(conv, 4, axis=1)
    act_input = jnp.tanh(netin)
    act_igate = jax.nn.sigmoid(igate)
    act_fgate = jax.nn.sigmoid(fgate)
    act_ogate = jax.nn.sigmoid(ogate)
    c_curr = act_fgate * c_prev + act_igate * act_input
    h_curr = act_ogate * jnp.tanh(c_curr)
    return h_curr, c_curr


if __name__ == "__main__":
    # Small shapes consistent with the module's forward.
    batch_size = 2
    input_size = 4
    lstm_cells = 8
    field_size = 16

    key = jax.random.PRNGKey(0)
    k_x, k_h, k_c, k_w, k_b = jax.random.split(key, 5)

    C_in = input_size + lstm_cells
    # Deterministic Conv1d-style init: U(-k, k), k = 1/sqrt(C_in * kernel_size).
    std = 1.0 / jnp.sqrt(C_in * 3.0)
    weight = jax.random.uniform(
        k_w, (4 * lstm_cells, C_in, 3), jnp.float32, minval=-std, maxval=std
    )
    bias = jax.random.uniform(
        k_b, (4 * lstm_cells,), jnp.float32, minval=-std, maxval=std
    )

    x = jax.random.normal(k_x, (batch_size, input_size, field_size), jnp.float32)
    h_prev = jax.random.normal(k_h, (batch_size, lstm_cells, field_size), jnp.float32)
    c_prev = jax.random.normal(k_c, (batch_size, lstm_cells, field_size), jnp.float32)

    h_curr, c_curr = conv_lstm_cell(x, h_prev, c_prev, weight, bias)
    jax.block_until_ready((h_curr, c_curr))

    h_ref, c_ref = ref_conv_lstm_cell(x, h_prev, c_prev, weight, bias)
    assert jnp.allclose(h_curr, h_ref, atol=1e-5, rtol=1e-5), "h mismatch"
    assert jnp.allclose(c_curr, c_ref, atol=1e-5, rtol=1e-5), "c mismatch"

    print("KERNEL_OK")
</pallas_src>

<mosaic_0001>
module attributes {stable_mosaic.version = 11 : i64} {
  func.func @_conv_lstm_kernel(%arg0: i32, %arg1: memref<12x32xf32, #tpu.memory_space<vmem>>, %arg2: memref<32x36xf32, #tpu.memory_space<vmem>>, %arg3: memref<32x1xf32, #tpu.memory_space<vmem>>, %arg4: memref<8x32xf32, #tpu.memory_space<vmem>>, %arg5: memref<8x32xf32, #tpu.memory_space<vmem>>, %arg6: memref<8x32xf32, #tpu.memory_space<vmem>>, %arg7: memref<12x34xf32, #tpu.memory_space<vmem>>, %arg8: memref<36x32xf32, #tpu.memory_space<vmem>>) attributes {dimension_semantics = [#tpu.dimension_semantics<parallel>], iteration_bounds = array<i64: 1>, scalar_prefetch = 0 : i64, scratch_operands = 2 : i64, tpu.core_type = #tpu.core_type<tc>, window_params = [{transform_indices = @transform_0, window_bounds = array<i64: 12, 32>}, {pipeline_mode = #tpu.pipeline_mode<synchronous>, transform_indices = @transform_1, window_bounds = array<i64: 32, 36>}, {pipeline_mode = #tpu.pipeline_mode<synchronous>, transform_indices = @transform_2, window_bounds = array<i64: 32, 1>}, {transform_indices = @transform_3, window_bounds = array<i64: 8, 32>}, {transform_indices = @transform_4, window_bounds = array<i64: 8, 32>}, {transform_indices = @transform_5, window_bounds = array<i64: 8, 32>}]} {
    %c0 = arith.constant 0 : index
    %c0_0 = arith.constant 0 : index
    %0 = vector.load %arg1[%c0, %c0_0] : memref<12x32xf32, #tpu.memory_space<vmem>>, vector<12x32xf32>
    %cst = arith.constant 0.000000e+00 : f32
    %1 = vector.broadcast %cst : f32 to vector<12x34xf32>
    %c0_1 = arith.constant 0 : index
    %c0_2 = arith.constant 0 : index
    %2 = vector.load %arg7[%c0_1, %c0_2] : memref<12x34xf32, #tpu.memory_space<vmem>>, vector<12x34xf32>
    tpu.vector_store %arg7[%c0_1, %c0_2], %1 {strides = array<i32>} : memref<12x34xf32, #tpu.memory_space<vmem>>, vector<12x34xf32>,
    %c0_3 = arith.constant 0 : index
    %c1 = arith.constant 1 : index
    %3 = vector.load %arg7[%c0_3, %c1] : memref<12x34xf32, #tpu.memory_space<vmem>>, vector<12x32xf32>
    tpu.vector_store %arg7[%c0_3, %c1], %0 {strides = array<i32>} : memref<12x34xf32, #tpu.memory_space<vmem>>, vector<12x32xf32>,
    %c0_4 = arith.constant 0 : index
    %c0_5 = arith.constant 0 : index
    %4 = vector.load %arg7[%c0_4, %c0_5] : memref<12x34xf32, #tpu.memory_space<vmem>>, vector<12x32xf32>
    %c0_6 = arith.constant 0 : index
    %c2 = arith.constant 2 : index
    %5 = vector.load %arg7[%c0_6, %c2] : memref<12x34xf32, #tpu.memory_space<vmem>>, vector<12x32xf32>
    %6 = tpu.iota {dimensions = array<i32: 1>} : vector<1x32xi32>
    %c16_i32 = arith.constant 16 : i32
    %c0_i32 = arith.constant 0 : i32
    %7 = arith.cmpi eq, %c16_i32, %c0_i32 : i32
    %c1_i32 = arith.constant 1 : i32
    %8 = arith.select %7, %c1_i32, %c16_i32 : i32
    %9 = vector.broadcast %8 : i32 to vector<1x32xi32>
    %10 = arith.remsi %6, %9 : vector<1x32xi32>
    %c0_i32_7 = arith.constant 0 : i32
    %11 = vector.broadcast %c0_i32_7 : i32 to vector<1x32xi32>
    %12 = arith.cmpi ne, %10, %11 : vector<1x32xi32>
    %c0_i32_8 = arith.constant 0 : i32
    %13 = vector.broadcast %c0_i32_8 : i32 to vector<1x32xi32>
    %14 = arith.cmpi slt, %10, %13 : vector<1x32xi32>
    %c0_i32_9 = arith.constant 0 : i32
    %15 = arith.cmpi slt, %8, %c0_i32_9 : i32
    %16 = vector.broadcast %15 : i1 to vector<1x32xi1>
    %17 = vector.broadcast %16 : vector<1x32xi1> to vector<1x32xi1>
    %18 = arith.xori %14, %17 : vector<1x32xi1>
    %19 = arith.andi %18, %12 : vector<1x32xi1>
    %20 = vector.broadcast %8 : i32 to vector<1x32xi32>
    %21 = arith.addi %10, %20 : vector<1x32xi32>
    %22 = arith.select %19, %21, %10 : vector<1x32xi1>, vector<1x32xi32>
    %c0_i32_10 = arith.constant 0 : i32
    %23 = vector.broadcast %c0_i32_10 : i32 to vector<1x32xi32>
    %24 = arith.cmpi eq, %22, %23 : vector<1x32xi32>
    %cst_11 = arith.constant 0.000000e+00 : f32
    %25 = vector.shape_cast %24 : vector<1x32xi1> to vector<1x32xi1>
    %26 = vector.broadcast %25 : vector<1x32xi1> to vector<12x32xi1>
    %27 = vector.broadcast %cst_11 : f32 to vector<12x32xf32>
    %28 = arith.select %26, %27, %4 : vector<12x32xi1>, vector<12x32xf32>
    %c15_i32 = arith.constant 15 : i32
    %29 = vector.broadcast %c15_i32 : i32 to vector<1x32xi32>
    %30 = arith.cmpi eq, %22, %29 : vector<1x32xi32>
    %cst_12 = arith.constant 0.000000e+00 : f32
    %31 = vector.shape_cast %30 : vector<1x32xi1> to vector<1x32xi1>
    %32 = vector.broadcast %31 : vector<1x32xi1> to vector<12x32xi1>
    %33 = vector.broadcast %cst_12 : f32 to vector<12x32xf32>
    %34 = arith.select %32, %33, %5 : vector<12x32xi1>, vector<12x32xf32>
    %c0_13 = arith.constant 0 : index
    %c0_14 = arith.constant 0 : index
    %35 = vector.load %arg8[%c0_13, %c0_14] : memref<36x32xf32, #tpu.memory_space<vmem>>, vector<12x32xf32>
    tpu.vector_store %arg8[%c0_13, %c0_14], %28 {strides = array<i32>} : memref<36x32xf32, #tpu.memory_space<vmem>>, vector<12x32xf32>,
    %c12 = arith.constant 12 : index
    %c0_15 = arith.constant 0 : index
    %36 = vector.load %arg8[%c12, %c0_15] : memref<36x32xf32, #tpu.memory_space<vmem>>, vector<12x32xf32>
    tpu.vector_store %arg8[%c12, %c0_15], %0 {strides = array<i32>} : memref<36x32xf32, #tpu.memory_space<vmem>>, vector<12x32xf32>,
    %c24 = arith.constant 24 : index
    %c0_16 = arith.constant 0 : index
    %37 = vector.load %arg8[%c24, %c0_16] : memref<36x32xf32, #tpu.memory_space<vmem>>, vector<12x32xf32>
    tpu.vector_store %arg8[%c24, %c0_16], %34 {strides = array<i32>} : memref<36x32xf32, #tpu.memory_space<vmem>>, vector<12x32xf32>,
    %c0_17 = arith.constant 0 : index
    %c0_18 = arith.constant 0 : index
    %38 = vector.load %arg2[%c0_17, %c0_18] : memref<32x36xf32, #tpu.memory_space<vmem>>, vector<32x36xf32>
    %c0_19 = arith.constant 0 : index
    %c0_20 = arith.constant 0 : index
    %39 = vector.load %arg8[%c0_19, %c0_20] : memref<36x32xf32, #tpu.memory_space<vmem>>, vector<36x32xf32>
    %cst_21 = arith.constant dense<0.000000e+00> : vector<32x32xf32>
    %40 = tpu.matmul %38, %39, %cst_21 {dimension_numbers = #tpu.dot_dimension_numbers<[1], [0], [0], [1], [0, 0, 1, 1], [], []>} : vector<32x36xf32>, vector<36x32xf32>, vector<32x32xf32> -> vector<32x32xf32>
    %c0_22 = arith.constant 0 : index
    %c0_23 = arith.constant 0 : index
    %41 = vector.load %arg3[%c0_22, %c0_23] : memref<32x1xf32, #tpu.memory_space<vmem>>, vector<32x1xf32>
    %42 = vector.broadcast %41 : vector<32x1xf32> to vector<32x32xf32>
    %43 = arith.addf %40, %42 : vector<32x32xf32>
    %44 = vector.extract_strided_slice %43 {offsets = [0, 0], sizes = [8, 32], strides = [1, 1]} : vector<32x32xf32> to vector<8x32xf32>
    %45 = vector.extract_strided_slice %43 {offsets = [8, 0], sizes = [8, 32], strides = [1, 1]} : vector<32x32xf32> to vector<8x32xf32>
    %46 = vector.extract_strided_slice %43 {offsets = [16, 0], sizes = [8, 32], strides = [1, 1]} : vector<32x32xf32> to vector<8x32xf32>
    %47 = vector.extract_strided_slice %43 {offsets = [24, 0], sizes = [8, 32], strides = [1, 1]} : vector<32x32xf32> to vector<8x32xf32>
    %48 = math.tanh %44 : vector<8x32xf32>
    %49 = arith.negf %45 : vector<8x32xf32>
    %50 = math.exp %49 : vector<8x32xf32>
    %cst_24 = arith.constant 1.000000e+00 : f32
    %51 = vector.broadcast %cst_24 : f32 to vector<8x32xf32>
    %52 = arith.addf %51, %50 : vector<8x32xf32>
    %53 = arith.divf %51, %52 : vector<8x32xf32>
    %54 = arith.negf %46 : vector<8x32xf32>
    %55 = math.exp %54 : vector<8x32xf32>
    %cst_25 = arith.constant 1.000000e+00 : f32
    %56 = vector.broadcast %cst_25 : f32 to vector<8x32xf32>
    %57 = arith.addf %56, %55 : vector<8x32xf32>
    %58 = arith.divf %56, %57 : vector<8x32xf32>
    %59 = arith.negf %47 : vector<8x32xf32>
    %60 = math.exp %59 : vector<8x32xf32>
    %cst_26 = arith.constant 1.000000e+00 : f32
    %61 = vector.broadcast %cst_26 : f32 to vector<8x32xf32>
    %62 = arith.addf %61, %60 : vector<8x32xf32>
    %63 = arith.divf %61, %62 : vector<8x32xf32>
    %c0_27 = arith.constant 0 : index
    %c0_28 = arith.constant 0 : index
    %64 = vector.load %arg4[%c0_27, %c0_28] : memref<8x32xf32, #tpu.memory_space<vmem>>, vector<8x32xf32>
    %65 = arith.mulf %58, %64 : vector<8x32xf32>
    %66 = arith.mulf %53, %48 : vector<8x32xf32>
    %67 = arith.addf %65, %66 : vector<8x32xf32>
    %68 = math.tanh %67 : vector<8x32xf32>
    %69 = arith.mulf %63, %68 : vector<8x32xf32>
    %c0_29 = arith.constant 0 : index
    %c0_30 = arith.constant 0 : index
    %70 = vector.load %arg5[%c0_29, %c0_30] : memref<8x32xf32, #tpu.memory_space<vmem>>, vector<8x32xf32>
    tpu.vector_store %arg5[%c0_29, %c0_30], %69 {strides = array<i32>} : memref<8x32xf32, #tpu.memory_space<vmem>>, vector<8x32xf32>,
    %c0_31 = arith.constant 0 : index
    %c0_32 = arith.constant 0 : index
    %71 = vector.load %arg6[%c0_31, %c0_32] : memref<8x32xf32, #tpu.memory_space<vmem>>, vector<8x32xf32>
    tpu.vector_store %arg6[%c0_31, %c0_32], %67 {strides = array<i32>} : memref<8x32xf32, #tpu.memory_space<vmem>>, vector<8x32xf32>,
    return
  }
  func.func @transform_0(%arg0: i32) -> (i32, i32) {
    %c0_i32 = arith.constant 0 : i32
    %c0_i32_0 = arith.constant 0 : i32
    return %c0_i32, %arg0 : i32, i32
  }
  func.func @transform_1(%arg0: i32) -> (i32, i32) {
    %c0_i32 = arith.constant 0 : i32
    %c0_i32_0 = arith.constant 0 : i32
    %c0_i32_1 = arith.constant 0 : i32
    return %c0_i32, %c0_i32_0 : i32, i32
  }
  func.func @transform_2(%arg0: i32) -> (i32, i32) {
    %c0_i32 = arith.constant 0 : i32
    %c0_i32_0 = arith.constant 0 : i32
    %c0_i32_1 = arith.constant 0 : i32
    return %c0_i32, %c0_i32_0 : i32, i32
  }
  func.func @transform_3(%arg0: i32) -> (i32, i32) {
    %c0_i32 = arith.constant 0 : i32
    %c0_i32_0 = arith.constant 0 : i32
    return %c0_i32, %arg0 : i32, i32
  }
  func.func @transform_4(%arg0: i32) -> (i32, i32) {
    %c0_i32 = arith.constant 0 : i32
    %c0_i32_0 = arith.constant 0 : i32
    return %c0_i32, %arg0 : i32, i32
  }
  func.func @transform_5(%arg0: i32) -> (i32, i32) {
    %c0_i32 = arith.constant 0 : i32
    %c0_i32_0 = arith.constant 0 : i32
    return %c0_i32, %arg0 : i32, i32
  }
}

</mosaic_0001>

<bundles_post_ra>
// kernel: conv_lstm_cell.1
= control target key start
LH: loop header
LB: loop body
LE: loop exit
PB: predicated region body
PF: predicated region fallthrough
CT: control target
= control target key end

     0   :  { %vm71_vm0 = vcmask 261120   ;;  %vm23_vm1 = vcmask 273408   ;;  %vm73_vm2 = vcmask 257024   ;;  %v314_v2 = vmov 0.0   ;;  %s315_s22 = smov 1   ;;  %s399_s0 = inlined_call_operand.vmem [shape: f32[12,32], index: 0, kind: input, shape index: {}]   ;;  %s400_s1 = inlined_call_operand.vmem [shape: f32[32,36], index: 1, kind: input, shape index: {}]   ;;  %s401_s2 = inlined_call_operand.vmem [shape: f32[32,1], index: 2, kind: input, shape index: {}]   ;;  %s402_s3 = inlined_call_operand.vmem [shape: f32[8,32], index: 3, kind: input, shape index: {}, may-alias: {3,5}]   ;;  %s403_s5 = inlined_call_operand.vmem [shape: f32[8,32], index: 5, kind: output, shape index: {1}, may-alias: {3,5}]   ;;  %s404_s4 = inlined_call_operand.vmem [shape: f32[8,32], index: 4, kind: output, shape index: {0}]  }
   0x1   :  { %v20_v0 = vld [vmem:[%s399_s0 + $0x8] sm:$0xf]  ;;  %v19_v1 = vld [vmem:[%s399_s0] sm:$0xff]  ;;  %24 = vst.msk [vmem:[#allocation2 + $0x8] sm:$0xf] %vm23_vm1, %v314_v2  ;;  %vm21_vm3 = vcmask 277504   ;;  %v39_v3 = vlaneseq }
   0x2   :  { %29 = vrot.lane.b32.xlu0 %v20_v0, %s315_s22  ;;  %76 = vst.msk [vmem:[#allocation3 + $0x14] sm:$0xf] %vm73_vm2, %v20_v0  ;;  %vm35_vm4 = vcmask 265224   ;;  %vm33_vm5 = vcmask 269320   ;;  %s316_s0 = smov 126   ;;  %v79_v12 = vld [vmem:[%s400_s1] sm:$0xff] }
   0x3   :  { %75 = vst.msk [vmem:[#allocation3 + $0xc] sm:$0xff] %vm71_vm0, %v19_v1  ;;  %v40_v4 = vand.u32 127, %v39_v3  ;;  %vm112_vm7 = vcmask 293888   ;;  %v81_v13 = vld [vmem:[%s400_s1 + $0x10] sm:$0xff]  ;;  %v317_v14 = vmov 0   ;;  %v89_v15 = vld [vmem:[%s401_s2 + $0x8] sm:$0xff] }
   0x4   :  { %22 = vst.msk [vmem:[#allocation2] sm:$0xff] %vm21_vm3, %v314_v2  ;;  %276 = vmatprep.mubr.msk.f32.mxu0 %vm112_vm7, %v79_v12  ;;  %279 = vmatprep.mubr.msk.f32.mxu1 %vm112_vm7, %v81_v13  ;;  %v90_v16 = vld [vmem:[%s401_s2 + $0x10] sm:$0xff]  ;;  %v91_v17 = vld [vmem:[%s401_s2 + $0x18] sm:$0xff]  ;;  %v88_v18 = vld [vmem:[%s401_s2] sm:$0xff]  ;;  %vm125_vm9 = vcmask 1043456  }
   0x5   :  { %v45_v6 = vand.u32 15, %v40_v4  ;;  %296 = vset.pattern.permute.xlu0 %v317_v14  ;;  %297 = vset.pattern.permute.xlu1 %v317_v14  ;;  %v80_v28 = vld [vmem:[%s400_s1 + $0x8] sm:$0xff]  ;;  %v82_v29 = vld [vmem:[%s400_s1 + $0x18] sm:$0xff]  ;;  %v233_v51 = vld [vmem:[%s402_s3] sm:$0xff] }
   0x6   :  { %27 = vrot.lane.b32.xlu0 %v19_v1, %s315_s22 }
   0x7   :  { %vm53_vm6 = vcmp.eq.s32.totalorder %v45_v6, 0  ;;  %vm58_vm8 = vcmp.eq.s32.totalorder %v45_v6, 15 }
   0xa   :  { %99 = vperm.xlu0 %296, %v89_v15   ;;  %v85_v25 = vld [vmem:[#allocation3 + $0x10] sm:$0xff] }
   0xe   :  { %109 = vperm.xlu0 %296, %v91_v17  }
  0x74   :  { %v30_v5 = vpop.permute.xlu0 %29 }
  0x75   :  { %36 = vst.msk [vmem:[#allocation2 + $0x8] sm:$0xf] %vm35_vm4, %v30_v5 }
  0x78   :  { %v28_v7 = vpop.permute.xlu0 %27 }
  0x79   :  { %34 = vst.msk [vmem:[#allocation2] sm:$0xff] %vm33_vm5, %v28_v7 }
  0x7c   :  { %v38_v8 = vld [vmem:[#allocation2 + $0x8] sm:$0xf] }
  0x7d   :  { %65 = vrot.lane.b32.xlu1 %v38_v8, %s316_s0  ;;  %v57_v9 = vsel %vm53_vm6, 0.0, %v38_v8 }
  0x7e   :  { %74 = vst.msk [vmem:[#allocation3 + $0x8] sm:$0xf] %vm73_vm2, %v57_v9 }
  0x80   :  { %v37_v10 = vld [vmem:[#allocation2] sm:$0xff] }
  0x81   :  { %63 = vrot.lane.b32.xlu1 %v37_v10, %s316_s0  ;;  %v56_v11 = vsel %vm53_vm6, 0.0, %v37_v10 }
  0x82   :  { %72 = vst.msk [vmem:[#allocation3] sm:$0xff] %vm71_vm0, %v56_v11 }
  0x85   :  { %104 = vperm.xlu1 %297, %v90_v16   ;;  %v84_v26 = vld [vmem:[#allocation3 + $0x8] sm:$0xff]  ;;  %v100_v30 = vpop.permute.xlu0 %99 }
  0x89   :  { %94 = vperm.xlu1 %297, %v88_v18   ;;  %v83_v27 = vld [vmem:[#allocation3] sm:$0xff]  ;;  %v110_v39 = vpop.permute.xlu0 %109 }
  0xef   :  { %v66_v19 = vpop.permute.xlu1 %65 }
  0xf0   :  { %v70_v20 = vsel %vm58_vm8, 0.0, %v66_v19 }
  0xf1   :  { %78 = vst.msk [vmem:[#allocation3 + $0x20] sm:$0xf] %vm73_vm2, %v70_v20 }
  0xf3   :  { %v64_v21 = vpop.permute.xlu1 %63 }
  0xf4   :  { %v69_v22 = vsel %vm58_vm8, 0.0, %v64_v21 }
  0xf5   :  { %77 = vst.msk [vmem:[#allocation3 + $0x18] sm:$0xff] %vm71_vm0, %v69_v22 }
  0xf8   :  { %v87_v23 = vld [vmem:[#allocation3 + $0x20] sm:$0xf] }
  0xf9   :  { %266 = vmatprep.subr.msk.mxu0 %vm125_vm9, %v87_v23  ;;  %282 = vmatprep.subr.msk.mxu1 %vm125_vm9, %v87_v23 }
  0xfa   :  { %267 = vmatpush3.msk.msra.mxu0 %vm125_vm9, %v87_v23  ;;  %287 = vmatpush3.msk.msra.mxu1 %vm125_vm9, %v87_v23 }
  0xfc   :  { %v86_v24 = vld [vmem:[#allocation3 + $0x18] sm:$0xff] }
  0xfd   :  { %268 = vmatprep.subr.mxu0 %v86_v24  ;;  %283 = vmatprep.subr.mxu1 %v86_v24 }
  0xfe   :  { %269 = vmatpush3.msra.mxu0 %v86_v24  ;;  %288 = vmatpush3.msra.mxu1 %v86_v24 }
  0xff   :  { %270 = vmatprep.subr.mxu0 %v85_v25  ;;  %284 = vmatprep.subr.mxu1 %v85_v25 }
 0x100   :  { %271 = vmatpush3.msra.mxu0 %v85_v25  ;;  %289 = vmatpush3.msra.mxu1 %v85_v25  ;;  %v105_v34 = vpop.permute.xlu1 %104 }
 0x101   :  { %272 = vmatprep.subr.mxu0 %v84_v26  ;;  %285 = vmatprep.subr.mxu1 %v84_v26 }
 0x102   :  { %273 = vmatpush3.msra.mxu0 %v84_v26  ;;  %290 = vmatpush3.msra.mxu1 %v84_v26 }
 0x103   :  { %274 = vmatprep.subr.mxu0 %v83_v27  ;;  %286 = vmatprep.subr.mxu1 %v83_v27 }
 0x104   :  { %275 = vmatpush3.msra.mxu0 %v83_v27  ;;  %291 = vmatpush3.msra.mxu1 %v83_v27  ;;  %v95_v41 = vpop.permute.xlu1 %94 }
 0x105   :  { %277 = vmatmul.mubr.msk.f32.vlgmr.msra.gmra.mxu0 %vm112_vm7, %v80_v28  ;;  %280 = vmatmul.mubr.msk.f32.vlgmr.msra.gmra.mxu1 %vm112_vm7, %v82_v29 }
 0x1c5   :  { %v278_v31 = vpop.f32.mrf.mxu0  ;;  %v281_v32 = vpop.f32.mrf.mxu1 }
 0x1c6   :  { %v201_v33 = vadd.f32 %v278_v31, %v100_v30  ;;  %v211_v40 = vadd.f32 %v281_v32, %v110_v39 }
 0x1c7   :  { %v205_v35 = vpop.f32.mrf.mxu1  ;;  %v195_v42 = vpop.f32.mrf.mxu0 }
 0x1c8   :  { %v254_v36 = vmul.f32 -1.442695, %v201_v33  ;;  %v206_v37 = vadd.f32 %v205_v35, %v105_v34  ;;  %v256_v43 = vmul.f32 -1.442695, %v211_v40  ;;  %v196_v46 = vadd.f32 %v195_v42, %v95_v41 }
 0x1ca   :  { %298 = vpow2.f32 %v254_v36  ;;  %v255_v38 = vmul.f32 -1.442695, %v206_v37 }
 0x1cc   :  { %300 = vpow2.f32 %v255_v38 }
 0x1cd   :  { %302 = vpow2.f32 %v256_v43 }
 0x1d7   :  { %v299_v44 = vpop.eup %298 }
 0x1d8   :  { %v218_v45 = vadd.f32 1.0, %v299_v44 }
 0x1d9   :  { %v301_v47 = vpop.eup %300 }
 0x1da   :  { %304 = vrcp.f32 %v218_v45  ;;  %v224_v48 = vadd.f32 1.0, %v301_v47  ;;  %v303_v49 = vpop.eup %302 }
 0x1db   :  { %306 = vtanh.f32 %v196_v46  ;;  %v230_v54 = vadd.f32 1.0, %v303_v49 }
 0x1dc   :  { %308 = vrcp.f32 %v224_v48 }
 0x1dd   :  { %310 = vrcp.f32 %v230_v54 }
 0x1e7   :  { %v305_v50 = vpop.eup %304 }
 0x1e8   :  { %v307_v52 = vpop.eup %306 }
 0x1e9   :  { %v309_v53 = vpop.eup %308  ;;  %v235_v55 = vmul.f32 %v307_v52, %v305_v50 }
 0x1ea   :  { %v234_v56 = vmul.f32 %v309_v53, %v233_v51  ;;  %v311_v58 = vpop.eup %310 }
 0x1ec   :  { %v236_v57 = vadd.f32 %v235_v55, %v234_v56 }
 0x1ee   :  { %312 = vtanh.f32 %v236_v57  ;;  %240 = vst.msk [vmem:[%s403_s5] sm:$0xff] %vm71_vm0, %v236_v57 }
 0x1fb   :  { %v313_v59 = vpop.eup %312 }
 0x1fc   :  { %v238_v60 = vmul.f32 %v313_v59, %v311_v58 }
 0x1fe   :  { %239 = vst.msk [vmem:[%s404_s4] sm:$0xff] %vm71_vm0, %v238_v60 }

</bundles_post_ra>
